<compile_context>
chip_gen: v7x
topology: tpu7x:2x2x1
jax: 0.10.0
libtpu: 0.0.40
codegen_flags: <defaults>
</compile_context>

<pallas_src>
import functools
import math

import jax
import jax.numpy as jnp
import numpy as np
from jax.experimental import pallas as pl
from jax.experimental.pallas import tpu as pltpu


# MXU operand precision.  f32 keeps 1e-4 parity with the f32 reference below.
# On v5e (bf16-only full-rate MXU) flip to jnp.bfloat16 (contractions are only
# K<=72 after tap folding) and loosen the parity check to ~1e-2.
MATMUL_DTYPE = jnp.float32


# ---------------------------------------------------------------------------
# In-kernel elementwise helpers (VPU/EUP friendly, f32)
# ---------------------------------------------------------------------------
def _erf_poly(x):
    # Abramowitz & Stegun 7.1.26 (|err| < 1.5e-7) -- exact-GELU semantics at f32.
    a1, a2, a3, a4, a5 = 0.254829592, -0.284496736, 1.421413741, -1.453152027, 1.061405429
    p = 0.3275911
    sgn = jnp.where(x >= 0.0, 1.0, -1.0)
    ax = jnp.abs(x)
    t = 1.0 / (1.0 + p * ax)
    poly = ((((a5 * t + a4) * t + a3) * t + a2) * t + a1) * t
    return sgn * (1.0 - poly * jnp.exp(-ax * ax))


def _gelu_exact(x):
    # PyTorch nn.GELU() default (erf formulation).
    return 0.5 * x * (1.0 + _erf_poly(x * 0.7071067811865476))


# ---------------------------------------------------------------------------
# Fused Down kernel (per-sample grid step)
# ---------------------------------------------------------------------------
def down_kernel(x_ref, mask_ref, w1_ref, g1_ref, b1_ref, w2_ref, g2_ref, b2_ref,
                emb_ref, o_ref, ext1_ref, col1_ref, ext2_ref, col2_ref,
                *, pitch, n_valid):
    L = x_ref.shape[2]               # pitched flat spatial width (multiple of 128)
    P = pitch + 1                    # halo width: covers tap offsets in [-(pitch+1), pitch+1]
    mask = mask_ref[...]             # (1, L) f32: 1.0 on data columns, 0.0 on gap columns

    def conv3x3(ext_ref, col_ref, src, w_ref):
        # 3x3 SAME conv on a channels-first pitched (C_in, L) tile:
        #  - write src into a zero-haloed scratch (halo = top/bottom zero padding;
        #    the zero gap columns between rows are the left/right padding),
        #  - build a (9*C_in, L) im2col stack in VMEM from 9 static shifted slices,
        #  - do ONE (C_out, 9*C_in) @ (9*C_in, L) MXU dot.
        cs = src.shape[0]
        # Zero only the halo strips (cheap (cs, P) stores).  Done every step:
        # a once-only pl.when(program_id==0) init is unsafe when the parallel
        # batch axis is split across v7x's two TensorCores (per-core scratch).
        ext_ref[:, :P] = jnp.zeros((cs, P), jnp.float32)
        ext_ref[:, P + L:] = jnp.zeros((cs, P), jnp.float32)
        ext_ref[:, P:P + L] = src
        xe = ext_ref[...]                                   # (cs, L + 2P)
        for dy in range(3):
            for dx in range(3):
                k = 3 * dy + dx
                off = (dy - 1) * pitch + (dx - 1)
                col_ref[k * cs:(k + 1) * cs, :] = xe[:, P + off:P + off + L]
        y = jnp.dot(w_ref[...].astype(MATMUL_DTYPE),
                    col_ref[...].astype(MATMUL_DTYPE),
                    preferred_element_type=jnp.float32)
        return y * mask                                     # re-zero gap columns

    def groupnorm1(y, g_ref, b_ref):
        # GroupNorm(num_groups=1), eps=1e-5, biased variance.  Two-pass
        # (centered) stats; gap columns are zero and excluded from the count.
        cnt = float(y.shape[0]) * float(n_valid)
        mean = jnp.sum(y) / cnt
        yc = (y - mean) * mask
        var = jnp.sum(yc * yc) / cnt
        return yc * jax.lax.rsqrt(var + 1e-5) * g_ref[...] + b_ref[...]

    # DoubleConv: conv1 -> GN -> GELU -> conv2 -> GN     (all tiles are (C, L))
    x = x_ref[0]                                            # (Cin, L)
    h = _gelu_exact(groupnorm1(conv3x3(ext1_ref, col1_ref, x, w1_ref),
                               g1_ref, b1_ref)) * mask
    y = groupnorm1(conv3x3(ext2_ref, col2_ref, h, w2_ref), g2_ref, b2_ref)

    # + time embedding (projected in the wrapper), broadcast over the lane dim.
    o_ref[0] = y + emb_ref[0]                               # (Cout, L), lane-dense store


# ---------------------------------------------------------------------------
# Down.forward wrapper
# ---------------------------------------------------------------------------
@jax.jit
def down_forward(x_nchw, t, params):
    # x_nchw: (N, Cin, H, W)   t: (N, EMB)   -> (N, Cout, H//2, W//2)
    N, Cin, H, W = x_nchw.shape
    Hp, Wp = H // 2, W // 2
    Cmid = params["w1"].shape[-1]
    Cout = params["w2"].shape[-1]

    # Row pitch: >= Wp + 1 so the zero gap columns double as the conv's
    # horizontal SAME padding, and Hp * pitch is a multiple of 128 so every
    # compute / store vreg is lane-dense (HW=64 previously forced masked stores).
    d = 128 // math.gcd(Hp, 128)
    pitch = -((Wp + 1) // -d) * d                           # ceil((Wp+1)/d)*d
    L = Hp * pitch
    P = pitch + 1
    HWv = Hp * Wp

    # MaxPool2d(2) + pitched re-layout (zero gaps): one small XLA fusion.
    # TODO(synk): fold the 2x2 max into the kernel's input DMA via stride-2
    # lane loads to drop this HBM round trip (blocked on sublane->lane merge).
    xp = x_nchw.reshape(N, Cin, Hp, 2, Wp, 2).max(axis=(3, 5))
    xp = jnp.pad(xp, ((0, 0), (0, 0), (0, 0), (0, pitch - Wp))).reshape(N, Cin, L)

    # data/gap column mask, shared by both convs and both GroupNorms
    mask = (jnp.arange(L, dtype=jnp.int32) % pitch < Wp).astype(jnp.float32).reshape(1, L)

    # conv weights HWIO (3,3,Ci,Co) -> tap-folded (Co, 9*Ci), tap-major columns
    w1 = jnp.transpose(params["w1"], (3, 0, 1, 2)).reshape(Cmid, 9 * Cin)
    w2 = jnp.transpose(params["w2"], (3, 0, 1, 2)).reshape(Cout, 9 * Cmid)
    g1 = params["g1"].reshape(Cmid, 1)
    b1 = params["b1"].reshape(Cmid, 1)
    g2 = params["g2"].reshape(Cout, 1)
    b2 = params["b2"].reshape(Cout, 1)

    # time-embedding projection hoisted out of the kernel: one batched XLA matmul
    emb = (jax.nn.silu(t) @ params["w_lin"] + params["b_lin"]).reshape(N, Cout, 1)

    # advisory cost estimate + explicit (generous) scoped-VMEM limit
    flops = 2 * N * L * 9 * (Cin * Cmid + Cmid * Cout)
    transcendentals = N * L * (Cmid + Cout)
    bytes_accessed = 4 * (N * Cin * L + N * Cout * L + w1.size + w2.size
                          + g1.size + b1.size + g2.size + b2.size
                          + emb.size + mask.size)
    vmem_need = 4 * (2 * (Cin * L + Cout * L + Cout)                      # dbl-buffered per-step blocks
                     + 2 * (mask.size + w1.size + w2.size + 4 * Cout + 2 * Cmid)
                     + (Cin + Cmid) * (L + 2 * P) + 9 * (Cin + Cmid) * L)  # scratches
    vmem_limit = int(min(max(4 * vmem_need, 16 * 1024 * 1024), 64 * 1024 * 1024))

    out = pl.pallas_call(
        functools.partial(down_kernel, pitch=pitch, n_valid=HWv),
        out_shape=jax.ShapeDtypeStruct((N, Cout, L), jnp.float32),
        grid=(N,),
        in_specs=[
            pl.BlockSpec((1, Cin, L), lambda n: (n, 0, 0)),       # pooled, pitched activation
            pl.BlockSpec((1, L), lambda n: (0, 0)),               # data/gap mask
            pl.BlockSpec((Cmid, 9 * Cin), lambda n: (0, 0)),      # conv1 folded weights
            pl.BlockSpec((Cmid, 1), lambda n: (0, 0)),            # gn1 gamma
            pl.BlockSpec((Cmid, 1), lambda n: (0, 0)),            # gn1 beta
            pl.BlockSpec((Cout, 9 * Cmid), lambda n: (0, 0)),     # conv2 folded weights
            pl.BlockSpec((Cout, 1), lambda n: (0, 0)),            # gn2 gamma
            pl.BlockSpec((Cout, 1), lambda n: (0, 0)),            # gn2 beta
            pl.BlockSpec((1, Cout, 1), lambda n: (n, 0, 0)),      # projected time embedding
        ],
        out_specs=pl.BlockSpec((1, Cout, L), lambda n: (n, 0, 0)),
        scratch_shapes=[
            pltpu.VMEM((Cin, L + 2 * P), jnp.float32),            # haloed conv1 input
            pltpu.VMEM((9 * Cin, L), jnp.float32),                # conv1 im2col stack
            pltpu.VMEM((Cmid, L + 2 * P), jnp.float32),           # haloed conv2 input
            pltpu.VMEM((9 * Cmid, L), jnp.float32),               # conv2 im2col stack
        ],
        compiler_params=pltpu.CompilerParams(
            dimension_semantics=("parallel",),
            vmem_limit_bytes=vmem_limit,
        ),
        cost_estimate=pl.CostEstimate(flops=flops,
                                      transcendentals=transcendentals,
                                      bytes_accessed=bytes_accessed),
    )(xp, mask, w1, g1, b1, w2, g2, b2, emb)

    # Drop the gap columns: (N, Cout, Hp*pitch) -> (N, Cout, Hp, Wp), still NCHW.
    return out.reshape(N, Cout, Hp, pitch)[:, :, :, :Wp]


# ---------------------------------------------------------------------------
# Pure-JAX reference (for correctness check only)
# ---------------------------------------------------------------------------
def reference_down(x_nchw, t, params):
    x = jnp.transpose(x_nchw, (0, 2, 3, 1))
    N, H, W, C = x.shape
    x = x.reshape(N, H // 2, 2, W // 2, 2, C).max(axis=(2, 4))

    def conv(x, w):  # w: (3,3,Cin,Cout) HWIO
        return jax.lax.conv_general_dilated(
            x, w, window_strides=(1, 1), padding="SAME",
            dimension_numbers=("NHWC", "HWIO", "NHWC"))

    def gn1(x, g, b):  # GroupNorm(num_groups=1), eps=1e-5, biased var
        mean = x.mean(axis=(1, 2, 3), keepdims=True)
        var = ((x - mean) ** 2).mean(axis=(1, 2, 3), keepdims=True)
        return (x - mean) / jnp.sqrt(var + 1e-5) * g + b

    h = conv(x, params["w1"])
    h = gn1(h, params["g1"], params["b1"])
    h = jax.nn.gelu(h, approximate=False)
    h = conv(h, params["w2"])
    h = gn1(h, params["g2"], params["b2"])
    emb = jax.nn.silu(t) @ params["w_lin"] + params["b_lin"]
    h = h + emb[:, None, None, :]
    return jnp.transpose(h, (0, 3, 1, 2))


# ---------------------------------------------------------------------------
if __name__ == "__main__":
    N, Cin, Cout, H, W, EMB = 2, 4, 8, 16, 16, 32
    Cmid = Cout  # DoubleConv default: mid_channels = out_channels

    key = jax.random.PRNGKey(0)
    ks = jax.random.split(key, 6)
    params = {
        # conv weights stored HWIO (== PyTorch (Cout,Cin,kh,kw).transpose(2,3,1,0))
        "w1": jax.random.normal(ks[0], (3, 3, Cin, Cmid), jnp.float32) * 0.1,
        "g1": jnp.ones((Cmid,), jnp.float32),
        "b1": jnp.zeros((Cmid,), jnp.float32),
        "w2": jax.random.normal(ks[1], (3, 3, Cmid, Cout), jnp.float32) * 0.1,
        "g2": jnp.ones((Cout,), jnp.float32),
        "b2": jnp.zeros((Cout,), jnp.float32),
        "w_lin": jax.random.normal(ks[2], (EMB, Cout), jnp.float32) * 0.1,
        "b_lin": jax.random.normal(ks[3], (Cout,), jnp.float32) * 0.1,
    }

    x = jax.random.normal(ks[4], (N, Cin, H, W), jnp.float32)
    t = jax.random.normal(ks[5], (N, EMB), jnp.float32)

    out = jax.block_until_ready(down_forward(x, t, params))

    ref = reference_down(x, t, params)
    np.testing.assert_allclose(np.asarray(out), np.asarray(ref), rtol=1e-4, atol=1e-4)
    assert out.shape == (N, Cout, H // 2, W // 2)

    print("KERNEL_OK")
</pallas_src>

<mosaic_0001>
module attributes {stable_mosaic.version = 11 : i64} {
  func.func @down_kernel(%arg0: i32, %arg1: memref<1x4x128xf32, #tpu.memory_space<vmem>>, %arg2: memref<1x128xf32, #tpu.memory_space<vmem>>, %arg3: memref<8x36xf32, #tpu.memory_space<vmem>>, %arg4: memref<8x1xf32, #tpu.memory_space<vmem>>, %arg5: memref<8x1xf32, #tpu.memory_space<vmem>>, %arg6: memref<8x72xf32, #tpu.memory_space<vmem>>, %arg7: memref<8x1xf32, #tpu.memory_space<vmem>>, %arg8: memref<8x1xf32, #tpu.memory_space<vmem>>, %arg9: memref<1x8x1xf32, #tpu.memory_space<vmem>>, %arg10: memref<1x8x128xf32, #tpu.memory_space<vmem>>, %arg11: memref<4x162xf32, #tpu.memory_space<vmem>>, %arg12: memref<36x128xf32, #tpu.memory_space<vmem>>, %arg13: memref<8x162xf32, #tpu.memory_space<vmem>>, %arg14: memref<72x128xf32, #tpu.memory_space<vmem>>) attributes {dimension_semantics = [#tpu.dimension_semantics<parallel>], iteration_bounds = array<i64: 2>, scalar_prefetch = 0 : i64, scratch_operands = 4 : i64, tpu.core_type = #tpu.core_type<tc>, window_params = [{transform_indices = @transform_0, window_bounds = array<i64: 1, 4, 128>}, {pipeline_mode = #tpu.pipeline_mode<synchronous>, transform_indices = @transform_1, window_bounds = array<i64: 1, 128>}, {pipeline_mode = #tpu.pipeline_mode<synchronous>, transform_indices = @transform_2, window_bounds = array<i64: 8, 36>}, {pipeline_mode = #tpu.pipeline_mode<synchronous>, transform_indices = @transform_3, window_bounds = array<i64: 8, 1>}, {pipeline_mode = #tpu.pipeline_mode<synchronous>, transform_indices = @transform_4, window_bounds = array<i64: 8, 1>}, {pipeline_mode = #tpu.pipeline_mode<synchronous>, transform_indices = @transform_5, window_bounds = array<i64: 8, 72>}, {pipeline_mode = #tpu.pipeline_mode<synchronous>, transform_indices = @transform_6, window_bounds = array<i64: 8, 1>}, {pipeline_mode = #tpu.pipeline_mode<synchronous>, transform_indices = @transform_7, window_bounds = array<i64: 8, 1>}, {transform_indices = @transform_8, window_bounds = array<i64: 1, 8, 1>}, {transform_indices = @transform_9, window_bounds = array<i64: 1, 8, 128>}]} {
    %c0 = arith.constant 0 : index
    %c0_0 = arith.constant 0 : index
    %0 = vector.load %arg2[%c0, %c0_0] : memref<1x128xf32, #tpu.memory_space<vmem>>, vector<1x128xf32>
    %c0_1 = arith.constant 0 : index
    %c0_2 = arith.constant 0 : index
    %c0_3 = arith.constant 0 : index
    %1 = vector.load %arg1[%c0_1, %c0_2, %c0_3] : memref<1x4x128xf32, #tpu.memory_space<vmem>>, vector<1x4x128xf32>
    %2 = vector.shape_cast %1 : vector<1x4x128xf32> to vector<4x128xf32>
    %cst = arith.constant 0.000000e+00 : f32
    %3 = vector.broadcast %cst : f32 to vector<4x17xf32>
    %c0_4 = arith.constant 0 : index
    %c0_5 = arith.constant 0 : index
    %4 = vector.load %arg11[%c0_4, %c0_5] : memref<4x162xf32, #tpu.memory_space<vmem>>, vector<4x17xf32>
    tpu.vector_store %arg11[%c0_4, %c0_5], %3 {strides = array<i32>} : memref<4x162xf32, #tpu.memory_space<vmem>>, vector<4x17xf32>,
    %cst_6 = arith.constant 0.000000e+00 : f32
    %5 = vector.broadcast %cst_6 : f32 to vector<4x17xf32>
    %c0_7 = arith.constant 0 : index
    %c145 = arith.constant 145 : index
    %6 = vector.load %arg11[%c0_7, %c145] : memref<4x162xf32, #tpu.memory_space<vmem>>, vector<4x17xf32>
    tpu.vector_store %arg11[%c0_7, %c145], %5 {strides = array<i32>} : memref<4x162xf32, #tpu.memory_space<vmem>>, vector<4x17xf32>,
    %c0_8 = arith.constant 0 : index
    %c17 = arith.constant 17 : index
    %7 = vector.load %arg11[%c0_8, %c17] : memref<4x162xf32, #tpu.memory_space<vmem>>, vector<4x128xf32>
    tpu.vector_store %arg11[%c0_8, %c17], %2 {strides = array<i32>} : memref<4x162xf32, #tpu.memory_space<vmem>>, vector<4x128xf32>,
    %c0_9 = arith.constant 0 : index
    %c0_10 = arith.constant 0 : index
    %8 = vector.load %arg11[%c0_9, %c0_10] : memref<4x162xf32, #tpu.memory_space<vmem>>, vector<4x162xf32>
    %9 = vector.extract_strided_slice %8 {offsets = [0, 0], sizes = [4, 128], strides = [1, 1]} : vector<4x162xf32> to vector<4x128xf32>
    %c0_11 = arith.constant 0 : index
    %c0_12 = arith.constant 0 : index
    %10 = vector.load %arg12[%c0_11, %c0_12] : memref<36x128xf32, #tpu.memory_space<vmem>>, vector<4x128xf32>
    tpu.vector_store %arg12[%c0_11, %c0_12], %9 {strides = array<i32>} : memref<36x128xf32, #tpu.memory_space<vmem>>, vector<4x128xf32>,
    %11 = vector.extract_strided_slice %8 {offsets = [0, 1], sizes = [4, 128], strides = [1, 1]} : vector<4x162xf32> to vector<4x128xf32>
    %c4 = arith.constant 4 : index
    %c0_13 = arith.constant 0 : index
    %12 = vector.load %arg12[%c4, %c0_13] : memref<36x128xf32, #tpu.memory_space<vmem>>, vector<4x128xf32>
    tpu.vector_store %arg12[%c4, %c0_13], %11 {strides = array<i32>} : memref<36x128xf32, #tpu.memory_space<vmem>>, vector<4x128xf32>,
    %13 = vector.extract_strided_slice %8 {offsets = [0, 2], sizes = [4, 128], strides = [1, 1]} : vector<4x162xf32> to vector<4x128xf32>
    %c8 = arith.constant 8 : index
    %c0_14 = arith.constant 0 : index
    %14 = vector.load %arg12[%c8, %c0_14] : memref<36x128xf32, #tpu.memory_space<vmem>>, vector<4x128xf32>
    tpu.vector_store %arg12[%c8, %c0_14], %13 {strides = array<i32>} : memref<36x128xf32, #tpu.memory_space<vmem>>, vector<4x128xf32>,
    %15 = vector.extract_strided_slice %8 {offsets = [0, 16], sizes = [4, 128], strides = [1, 1]} : vector<4x162xf32> to vector<4x128xf32>
    %c12 = arith.constant 12 : index
    %c0_15 = arith.constant 0 : index
    %16 = vector.load %arg12[%c12, %c0_15] : memref<36x128xf32, #tpu.memory_space<vmem>>, vector<4x128xf32>
    tpu.vector_store %arg12[%c12, %c0_15], %15 {strides = array<i32>} : memref<36x128xf32, #tpu.memory_space<vmem>>, vector<4x128xf32>,
    %17 = vector.extract_strided_slice %8 {offsets = [0, 17], sizes = [4, 128], strides = [1, 1]} : vector<4x162xf32> to vector<4x128xf32>
    %c16 = arith.constant 16 : index
    %c0_16 = arith.constant 0 : index
    %18 = vector.load %arg12[%c16, %c0_16] : memref<36x128xf32, #tpu.memory_space<vmem>>, vector<4x128xf32>
    tpu.vector_store %arg12[%c16, %c0_16], %17 {strides = array<i32>} : memref<36x128xf32, #tpu.memory_space<vmem>>, vector<4x128xf32>,
    %19 = vector.extract_strided_slice %8 {offsets = [0, 18], sizes = [4, 128], strides = [1, 1]} : vector<4x162xf32> to vector<4x128xf32>
    %c20 = arith.constant 20 : index
    %c0_17 = arith.constant 0 : index
    %20 = vector.load %arg12[%c20, %c0_17] : memref<36x128xf32, #tpu.memory_space<vmem>>, vector<4x128xf32>
    tpu.vector_store %arg12[%c20, %c0_17], %19 {strides = array<i32>} : memref<36x128xf32, #tpu.memory_space<vmem>>, vector<4x128xf32>,
    %21 = vector.extract_strided_slice %8 {offsets = [0, 32], sizes = [4, 128], strides = [1, 1]} : vector<4x162xf32> to vector<4x128xf32>
    %c24 = arith.constant 24 : index
    %c0_18 = arith.constant 0 : index
    %22 = vector.load %arg12[%c24, %c0_18] : memref<36x128xf32, #tpu.memory_space<vmem>>, vector<4x128xf32>
    tpu.vector_store %arg12[%c24, %c0_18], %21 {strides = array<i32>} : memref<36x128xf32, #tpu.memory_space<vmem>>, vector<4x128xf32>,
    %23 = vector.extract_strided_slice %8 {offsets = [0, 33], sizes = [4, 128], strides = [1, 1]} : vector<4x162xf32> to vector<4x128xf32>
    %c28 = arith.constant 28 : index
    %c0_19 = arith.constant 0 : index
    %24 = vector.load %arg12[%c28, %c0_19] : memref<36x128xf32, #tpu.memory_space<vmem>>, vector<4x128xf32>
    tpu.vector_store %arg12[%c28, %c0_19], %23 {strides = array<i32>} : memref<36x128xf32, #tpu.memory_space<vmem>>, vector<4x128xf32>,
    %25 = vector.extract_strided_slice %8 {offsets = [0, 34], sizes = [4, 128], strides = [1, 1]} : vector<4x162xf32> to vector<4x128xf32>
    %c32 = arith.constant 32 : index
    %c0_20 = arith.constant 0 : index
    %26 = vector.load %arg12[%c32, %c0_20] : memref<36x128xf32, #tpu.memory_space<vmem>>, vector<4x128xf32>
    tpu.vector_store %arg12[%c32, %c0_20], %25 {strides = array<i32>} : memref<36x128xf32, #tpu.memory_space<vmem>>, vector<4x128xf32>,
    %c0_21 = arith.constant 0 : index
    %c0_22 = arith.constant 0 : index
    %27 = vector.load %arg3[%c0_21, %c0_22] : memref<8x36xf32, #tpu.memory_space<vmem>>, vector<8x36xf32>
    %c0_23 = arith.constant 0 : index
    %c0_24 = arith.constant 0 : index
    %28 = vector.load %arg12[%c0_23, %c0_24] : memref<36x128xf32, #tpu.memory_space<vmem>>, vector<36x128xf32>
    %cst_25 = arith.constant dense<0.000000e+00> : vector<8x128xf32>
    %29 = tpu.matmul %27, %28, %cst_25 {dimension_numbers = #tpu.dot_dimension_numbers<[1], [0], [0], [1], [0, 0, 1, 1], [], []>} : vector<8x36xf32>, vector<36x128xf32>, vector<8x128xf32> -> vector<8x128xf32>
    %30 = vector.broadcast %0 : vector<1x128xf32> to vector<8x128xf32>
    %31 = arith.mulf %29, %30 : vector<8x128xf32>
    %32 = vector.shape_cast %31 : vector<8x128xf32> to vector<1x8x128xf32>
    %cst_26 = arith.constant dense<0.000000e+00> : vector<1xf32>
    %33 = vector.multi_reduction <add>, %32, %cst_26 [1, 2] : vector<1x8x128xf32> to vector<1xf32>
    %34 = vector.shape_cast %33 : vector<1xf32> to vector<1x1x1xf32>
    %35 = vector.extract %34[0, 0, 0] : f32 from vector<1x1x1xf32>
    %cst_27 = arith.constant 5.120000e+02 : f32
    %36 = arith.divf %35, %cst_27 : f32
    %37 = vector.broadcast %36 : f32 to vector<8x128xf32>
    %38 = arith.subf %31, %37 : vector<8x128xf32>
    %39 = vector.broadcast %0 : vector<1x128xf32> to vector<8x128xf32>
    %40 = arith.mulf %38, %39 : vector<8x128xf32>
    %41 = arith.mulf %40, %40 : vector<8x128xf32>
    %42 = vector.shape_cast %41 : vector<8x128xf32> to vector<1x8x128xf32>
    %cst_28 = arith.constant dense<0.000000e+00> : vector<1xf32>
    %43 = vector.multi_reduction <add>, %42, %cst_28 [1, 2] : vector<1x8x128xf32> to vector<1xf32>
    %44 = vector.shape_cast %43 : vector<1xf32> to vector<1x1x1xf32>
    %45 = vector.extract %44[0, 0, 0] : f32 from vector<1x1x1xf32>
    %cst_29 = arith.constant 5.120000e+02 : f32
    %46 = arith.divf %45, %cst_29 : f32
    %cst_30 = arith.constant 9.99999974E-6 : f32
    %47 = arith.addf %46, %cst_30 : f32
    %48 = math.rsqrt %47 : f32
    %49 = vector.broadcast %48 : f32 to vector<8x128xf32>
    %50 = arith.mulf %40, %49 : vector<8x128xf32>
    %c0_31 = arith.constant 0 : index
    %c0_32 = arith.constant 0 : index
    %51 = vector.load %arg4[%c0_31, %c0_32] : memref<8x1xf32, #tpu.memory_space<vmem>>, vector<8x1xf32>
    %52 = vector.broadcast %51 : vector<8x1xf32> to vector<8x128xf32>
    %53 = arith.mulf %50, %52 : vector<8x128xf32>
    %c0_33 = arith.constant 0 : index
    %c0_34 = arith.constant 0 : index
    %54 = vector.load %arg5[%c0_33, %c0_34] : memref<8x1xf32, #tpu.memory_space<vmem>>, vector<8x1xf32>
    %55 = vector.broadcast %54 : vector<8x1xf32> to vector<8x128xf32>
    %56 = arith.addf %53, %55 : vector<8x128xf32>
    %cst_35 = arith.constant 5.000000e-01 : f32
    %57 = vector.broadcast %cst_35 : f32 to vector<8x128xf32>
    %58 = arith.mulf %57, %56 : vector<8x128xf32>
    %cst_36 = arith.constant 0.707106769 : f32
    %59 = vector.broadcast %cst_36 : f32 to vector<8x128xf32>
    %60 = arith.mulf %56, %59 : vector<8x128xf32>
    %cst_37 = arith.constant 0.000000e+00 : f32
    %61 = vector.broadcast %cst_37 : f32 to vector<8x128xf32>
    %62 = arith.cmpf oge, %60, %61 : vector<8x128xf32>
    %cst_38 = arith.constant 1.000000e+00 : f32
    %cst_39 = arith.constant -1.000000e+00 : f32
    %63 = vector.broadcast %cst_38 : f32 to vector<8x128xf32>
    %64 = vector.broadcast %cst_39 : f32 to vector<8x128xf32>
    %65 = arith.select %62, %63, %64 : vector<8x128xi1>, vector<8x128xf32>
    %66 = math.absf %60 : vector<8x128xf32>
    %cst_40 = arith.constant 0.327591091 : f32
    %67 = vector.broadcast %cst_40 : f32 to vector<8x128xf32>
    %68 = arith.mulf %67, %66 : vector<8x128xf32>
    %cst_41 = arith.constant 1.000000e+00 : f32
    %69 = vector.broadcast %cst_41 : f32 to vector<8x128xf32>
    %70 = arith.addf %69, %68 : vector<8x128xf32>
    %cst_42 = arith.constant 1.000000e+00 : f32
    %71 = vector.broadcast %cst_42 : f32 to vector<8x128xf32>
    %72 = arith.divf %71, %70 : vector<8x128xf32>
    %cst_43 = arith.constant 1.06140542 : f32
    %73 = vector.broadcast %cst_43 : f32 to vector<8x128xf32>
    %74 = arith.mulf %73, %72 : vector<8x128xf32>
    %cst_44 = arith.constant -1.45315206 : f32
    %75 = vector.broadcast %cst_44 : f32 to vector<8x128xf32>
    %76 = arith.addf %74, %75 : vector<8x128xf32>
    %77 = arith.mulf %76, %72 : vector<8x128xf32>
    %cst_45 = arith.constant 1.42141378 : f32
    %78 = vector.broadcast %cst_45 : f32 to vector<8x128xf32>
    %79 = arith.addf %77, %78 : vector<8x128xf32>
    %80 = arith.mulf %79, %72 : vector<8x128xf32>
    %cst_46 = arith.constant -0.284496725 : f32
    %81 = vector.broadcast %cst_46 : f32 to vector<8x128xf32>
    %82 = arith.addf %80, %81 : vector<8x128xf32>
    %83 = arith.mulf %82, %72 : vector<8x128xf32>
    %cst_47 = arith.constant 0.254829586 : f32
    %84 = vector.broadcast %cst_47 : f32 to vector<8x128xf32>
    %85 = arith.addf %83, %84 : vector<8x128xf32>
    %86 = arith.mulf %85, %72 : vector<8x128xf32>
    %cst_48 = arith.constant 0.000000e+00 : f32
    %87 = vector.broadcast %cst_48 : f32 to vector<8x128xf32>
    %88 = arith.subf %87, %66 : vector<8x128xf32>
    %89 = arith.mulf %88, %66 : vector<8x128xf32>
    %90 = math.exp %89 : vector<8x128xf32>
    %91 = arith.mulf %86, %90 : vector<8x128xf32>
    %cst_49 = arith.constant 1.000000e+00 : f32
    %92 = vector.broadcast %cst_49 : f32 to vector<8x128xf32>
    %93 = arith.subf %92, %91 : vector<8x128xf32>
    %94 = arith.mulf %65, %93 : vector<8x128xf32>
    %cst_50 = arith.constant 1.000000e+00 : f32
    %95 = vector.broadcast %cst_50 : f32 to vector<8x128xf32>
    %96 = arith.addf %95, %94 : vector<8x128xf32>
    %97 = arith.mulf %58, %96 : vector<8x128xf32>
    %98 = vector.broadcast %0 : vector<1x128xf32> to vector<8x128xf32>
    %99 = arith.mulf %97, %98 : vector<8x128xf32>
    %cst_51 = arith.constant 0.000000e+00 : f32
    %100 = vector.broadcast %cst_51 : f32 to vector<8x17xf32>
    %c0_52 = arith.constant 0 : index
    %c0_53 = arith.constant 0 : index
    %101 = vector.load %arg13[%c0_52, %c0_53] : memref<8x162xf32, #tpu.memory_space<vmem>>, vector<8x17xf32>
    tpu.vector_store %arg13[%c0_52, %c0_53], %100 {strides = array<i32>} : memref<8x162xf32, #tpu.memory_space<vmem>>, vector<8x17xf32>,
    %cst_54 = arith.constant 0.000000e+00 : f32
    %102 = vector.broadcast %cst_54 : f32 to vector<8x17xf32>
    %c0_55 = arith.constant 0 : index
    %c145_56 = arith.constant 145 : index
    %103 = vector.load %arg13[%c0_55, %c145_56] : memref<8x162xf32, #tpu.memory_space<vmem>>, vector<8x17xf32>
    tpu.vector_store %arg13[%c0_55, %c145_56], %102 {strides = array<i32>} : memref<8x162xf32, #tpu.memory_space<vmem>>, vector<8x17xf32>,
    %c0_57 = arith.constant 0 : index
    %c17_58 = arith.constant 17 : index
    %104 = vector.load %arg13[%c0_57, %c17_58] : memref<8x162xf32, #tpu.memory_space<vmem>>, vector<8x128xf32>
    tpu.vector_store %arg13[%c0_57, %c17_58], %99 {strides = array<i32>} : memref<8x162xf32, #tpu.memory_space<vmem>>, vector<8x128xf32>,
    %c0_59 = arith.constant 0 : index
    %c0_60 = arith.constant 0 : index
    %105 = vector.load %arg13[%c0_59, %c0_60] : memref<8x162xf32, #tpu.memory_space<vmem>>, vector<8x162xf32>
    %106 = vector.extract_strided_slice %105 {offsets = [0, 0], sizes = [8, 128], strides = [1, 1]} : vector<8x162xf32> to vector<8x128xf32>
    %c0_61 = arith.constant 0 : index
    %c0_62 = arith.constant 0 : index
    %107 = vector.load %arg14[%c0_61, %c0_62] : memref<72x128xf32, #tpu.memory_space<vmem>>, vector<8x128xf32>
    tpu.vector_store %arg14[%c0_61, %c0_62], %106 {strides = array<i32>} : memref<72x128xf32, #tpu.memory_space<vmem>>, vector<8x128xf32>,
    %108 = vector.extract_strided_slice %105 {offsets = [0, 1], sizes = [8, 128], strides = [1, 1]} : vector<8x162xf32> to vector<8x128xf32>
    %c8_63 = arith.constant 8 : index
    %c0_64 = arith.constant 0 : index
    %109 = vector.load %arg14[%c8_63, %c0_64] : memref<72x128xf32, #tpu.memory_space<vmem>>, vector<8x128xf32>
    tpu.vector_store %arg14[%c8_63, %c0_64], %108 {strides = array<i32>} : memref<72x128xf32, #tpu.memory_space<vmem>>, vector<8x128xf32>,
    %110 = vector.extract_strided_slice %105 {offsets = [0, 2], sizes = [8, 128], strides = [1, 1]} : vector<8x162xf32> to vector<8x128xf32>
    %c16_65 = arith.constant 16 : index
    %c0_66 = arith.constant 0 : index
    %111 = vector.load %arg14[%c16_65, %c0_66] : memref<72x128xf32, #tpu.memory_space<vmem>>, vector<8x128xf32>
    tpu.vector_store %arg14[%c16_65, %c0_66], %110 {strides = array<i32>} : memref<72x128xf32, #tpu.memory_space<vmem>>, vector<8x128xf32>,
    %112 = vector.extract_strided_slice %105 {offsets = [0, 16], sizes = [8, 128], strides = [1, 1]} : vector<8x162xf32> to vector<8x128xf32>
    %c24_67 = arith.constant 24 : index
    %c0_68 = arith.constant 0 : index
    %113 = vector.load %arg14[%c24_67, %c0_68] : memref<72x128xf32, #tpu.memory_space<vmem>>, vector<8x128xf32>
    tpu.vector_store %arg14[%c24_67, %c0_68], %112 {strides = array<i32>} : memref<72x128xf32, #tpu.memory_space<vmem>>, vector<8x128xf32>,
    %114 = vector.extract_strided_slice %105 {offsets = [0, 17], sizes = [8, 128], strides = [1, 1]} : vector<8x162xf32> to vector<8x128xf32>
    %c32_69 = arith.constant 32 : index
    %c0_70 = arith.constant 0 : index
    %115 = vector.load %arg14[%c32_69, %c0_70] : memref<72x128xf32, #tpu.memory_space<vmem>>, vector<8x128xf32>
    tpu.vector_store %arg14[%c32_69, %c0_70], %114 {strides = array<i32>} : memref<72x128xf32, #tpu.memory_space<vmem>>, vector<8x128xf32>,
    %116 = vector.extract_strided_slice %105 {offsets = [0, 18], sizes = [8, 128], strides = [1, 1]} : vector<8x162xf32> to vector<8x128xf32>
    %c40 = arith.constant 40 : index
    %c0_71 = arith.constant 0 : index
    %117 = vector.load %arg14[%c40, %c0_71] : memref<72x128xf32, #tpu.memory_space<vmem>>, vector<8x128xf32>
    tpu.vector_store %arg14[%c40, %c0_71], %116 {strides = array<i32>} : memref<72x128xf32, #tpu.memory_space<vmem>>, vector<8x128xf32>,
    %118 = vector.extract_strided_slice %105 {offsets = [0, 32], sizes = [8, 128], strides = [1, 1]} : vector<8x162xf32> to vector<8x128xf32>
    %c48 = arith.constant 48 : index
    %c0_72 = arith.constant 0 : index
    %119 = vector.load %arg14[%c48, %c0_72] : memref<72x128xf32, #tpu.memory_space<vmem>>, vector<8x128xf32>
    tpu.vector_store %arg14[%c48, %c0_72], %118 {strides = array<i32>} : memref<72x128xf32, #tpu.memory_space<vmem>>, vector<8x128xf32>,
    %120 = vector.extract_strided_slice %105 {offsets = [0, 33], sizes = [8, 128], strides = [1, 1]} : vector<8x162xf32> to vector<8x128xf32>
    %c56 = arith.constant 56 : index
    %c0_73 = arith.constant 0 : index
    %121 = vector.load %arg14[%c56, %c0_73] : memref<72x128xf32, #tpu.memory_space<vmem>>, vector<8x128xf32>
    tpu.vector_store %arg14[%c56, %c0_73], %120 {strides = array<i32>} : memref<72x128xf32, #tpu.memory_space<vmem>>, vector<8x128xf32>,
    %122 = vector.extract_strided_slice %105 {offsets = [0, 34], sizes = [8, 128], strides = [1, 1]} : vector<8x162xf32> to vector<8x128xf32>
    %c64 = arith.constant 64 : index
    %c0_74 = arith.constant 0 : index
    %123 = vector.load %arg14[%c64, %c0_74] : memref<72x128xf32, #tpu.memory_space<vmem>>, vector<8x128xf32>
    tpu.vector_store %arg14[%c64, %c0_74], %122 {strides = array<i32>} : memref<72x128xf32, #tpu.memory_space<vmem>>, vector<8x128xf32>,
    %c0_75 = arith.constant 0 : index
    %c0_76 = arith.constant 0 : index
    %124 = vector.load %arg6[%c0_75, %c0_76] : memref<8x72xf32, #tpu.memory_space<vmem>>, vector<8x72xf32>
    %c0_77 = arith.constant 0 : index
    %c0_78 = arith.constant 0 : index
    %125 = vector.load %arg14[%c0_77, %c0_78] : memref<72x128xf32, #tpu.memory_space<vmem>>, vector<72x128xf32>
    %cst_79 = arith.constant dense<0.000000e+00> : vector<8x128xf32>
    %126 = tpu.matmul %124, %125, %cst_79 {dimension_numbers = #tpu.dot_dimension_numbers<[1], [0], [0], [1], [0, 0, 1, 1], [], []>} : vector<8x72xf32>, vector<72x128xf32>, vector<8x128xf32> -> vector<8x128xf32>
    %127 = vector.broadcast %0 : vector<1x128xf32> to vector<8x128xf32>
    %128 = arith.mulf %126, %127 : vector<8x128xf32>
    %129 = vector.shape_cast %128 : vector<8x128xf32> to vector<1x8x128xf32>
    %cst_80 = arith.constant dense<0.000000e+00> : vector<1xf32>
    %130 = vector.multi_reduction <add>, %129, %cst_80 [1, 2] : vector<1x8x128xf32> to vector<1xf32>
    %131 = vector.shape_cast %130 : vector<1xf32> to vector<1x1x1xf32>
    %132 = vector.extract %131[0, 0, 0] : f32 from vector<1x1x1xf32>
    %cst_81 = arith.constant 5.120000e+02 : f32
    %133 = arith.divf %132, %cst_81 : f32
    %134 = vector.broadcast %133 : f32 to vector<8x128xf32>
    %135 = arith.subf %128, %134 : vector<8x128xf32>
    %136 = vector.broadcast %0 : vector<1x128xf32> to vector<8x128xf32>
    %137 = arith.mulf %135, %136 : vector<8x128xf32>
    %138 = arith.mulf %137, %137 : vector<8x128xf32>
    %139 = vector.shape_cast %138 : vector<8x128xf32> to vector<1x8x128xf32>
    %cst_82 = arith.constant dense<0.000000e+00> : vector<1xf32>
    %140 = vector.multi_reduction <add>, %139, %cst_82 [1, 2] : vector<1x8x128xf32> to vector<1xf32>
    %141 = vector.shape_cast %140 : vector<1xf32> to vector<1x1x1xf32>
    %142 = vector.extract %141[0, 0, 0] : f32 from vector<1x1x1xf32>
    %cst_83 = arith.constant 5.120000e+02 : f32
    %143 = arith.divf %142, %cst_83 : f32
    %cst_84 = arith.constant 9.99999974E-6 : f32
    %144 = arith.addf %143, %cst_84 : f32
    %145 = math.rsqrt %144 : f32
    %146 = vector.broadcast %145 : f32 to vector<8x128xf32>
    %147 = arith.mulf %137, %146 : vector<8x128xf32>
    %c0_85 = arith.constant 0 : index
    %c0_86 = arith.constant 0 : index
    %148 = vector.load %arg7[%c0_85, %c0_86] : memref<8x1xf32, #tpu.memory_space<vmem>>, vector<8x1xf32>
    %149 = vector.broadcast %148 : vector<8x1xf32> to vector<8x128xf32>
    %150 = arith.mulf %147, %149 : vector<8x128xf32>
    %c0_87 = arith.constant 0 : index
    %c0_88 = arith.constant 0 : index
    %151 = vector.load %arg8[%c0_87, %c0_88] : memref<8x1xf32, #tpu.memory_space<vmem>>, vector<8x1xf32>
    %152 = vector.broadcast %151 : vector<8x1xf32> to vector<8x128xf32>
    %153 = arith.addf %150, %152 : vector<8x128xf32>
    %c0_89 = arith.constant 0 : index
    %c0_90 = arith.constant 0 : index
    %c0_91 = arith.constant 0 : index
    %154 = vector.load %arg9[%c0_89, %c0_90, %c0_91] : memref<1x8x1xf32, #tpu.memory_space<vmem>>, vector<1x8x1xf32>
    %155 = vector.shape_cast %154 : vector<1x8x1xf32> to vector<8x1xf32>
    %156 = vector.broadcast %155 : vector<8x1xf32> to vector<8x128xf32>
    %157 = arith.addf %153, %156 : vector<8x128xf32>
    %c0_92 = arith.constant 0 : index
    %c0_93 = arith.constant 0 : index
    %c0_94 = arith.constant 0 : index
    %158 = vector.load %arg10[%c0_92, %c0_93, %c0_94] : memref<1x8x128xf32, #tpu.memory_space<vmem>>, vector<1x8x128xf32>
    %159 = vector.shape_cast %158 : vector<1x8x128xf32> to vector<8x128xf32>
    %160 = vector.shape_cast %157 : vector<8x128xf32> to vector<1x8x128xf32>
    tpu.vector_store %arg10[%c0_92, %c0_93, %c0_94], %160 {strides = array<i32>} : memref<1x8x128xf32, #tpu.memory_space<vmem>>, vector<1x8x128xf32>,
    return
  }
  func.func @transform_0(%arg0: i32) -> (i32, i32, i32) {
    %c0_i32 = arith.constant 0 : i32
    %c0_i32_0 = arith.constant 0 : i32
    %c0_i32_1 = arith.constant 0 : i32
    return %arg0, %c0_i32, %c0_i32_0 : i32, i32, i32
  }
  func.func @transform_1(%arg0: i32) -> (i32, i32) {
    %c0_i32 = arith.constant 0 : i32
    %c0_i32_0 = arith.constant 0 : i32
    %c0_i32_1 = arith.constant 0 : i32
    return %c0_i32, %c0_i32_0 : i32, i32
  }
  func.func @transform_2(%arg0: i32) -> (i32, i32) {
    %c0_i32 = arith.constant 0 : i32
    %c0_i32_0 = arith.constant 0 : i32
    %c0_i32_1 = arith.constant 0 : i32
    return %c0_i32, %c0_i32_0 : i32, i32
  }
  func.func @transform_3(%arg0: i32) -> (i32, i32) {
    %c0_i32 = arith.constant 0 : i32
    %c0_i32_0 = arith.constant 0 : i32
    %c0_i32_1 = arith.constant 0 : i32
    return %c0_i32, %c0_i32_0 : i32, i32
  }
  func.func @transform_4(%arg0: i32) -> (i32, i32) {
    %c0_i32 = arith.constant 0 : i32
    %c0_i32_0 = arith.constant 0 : i32
    %c0_i32_1 = arith.constant 0 : i32
    return %c0_i32, %c0_i32_0 : i32, i32
  }
  func.func @transform_5(%arg0: i32) -> (i32, i32) {
    %c0_i32 = arith.constant 0 : i32
    %c0_i32_0 = arith.constant 0 : i32
    %c0_i32_1 = arith.constant 0 : i32
    return %c0_i32, %c0_i32_0 : i32, i32
  }
  func.func @transform_6(%arg0: i32) -> (i32, i32) {
    %c0_i32 = arith.constant 0 : i32
    %c0_i32_0 = arith.constant 0 : i32
    %c0_i32_1 = arith.constant 0 : i32
    return %c0_i32, %c0_i32_0 : i32, i32
  }
  func.func @transform_7(%arg0: i32) -> (i32, i32) {
    %c0_i32 = arith.constant 0 : i32
    %c0_i32_0 = arith.constant 0 : i32
    %c0_i32_1 = arith.constant 0 : i32
    return %c0_i32, %c0_i32_0 : i32, i32
  }
  func.func @transform_8(%arg0: i32) -> (i32, i32, i32) {
    %c0_i32 = arith.constant 0 : i32
    %c0_i32_0 = arith.constant 0 : i32
    %c0_i32_1 = arith.constant 0 : i32
    return %arg0, %c0_i32, %c0_i32_0 : i32, i32, i32
  }
  func.func @transform_9(%arg0: i32) -> (i32, i32, i32) {
    %c0_i32 = arith.constant 0 : i32
    %c0_i32_0 = arith.constant 0 : i32
    %c0_i32_1 = arith.constant 0 : i32
    return %arg0, %c0_i32, %c0_i32_0 : i32, i32, i32
  }
}

</mosaic_0001>

<bundles_post_ra>
// kernel: down_forward.1
= control target key start
LH: loop header
LB: loop body
LE: loop exit
PB: predicated region body
PF: predicated region fallthrough
CT: control target
= control target key end

     0   :  { %s1108_s30 = smov 0   ;;  %s1224_s0 = inlined_call_operand.vmem [shape: f32[2,4,128], index: 0, kind: input, shape index: {}]   ;;  %s1225_s1 = inlined_call_operand.vmem [shape: f32[1,128], index: 1, kind: input, shape index: {}]   ;;  %s1226_s2 = inlined_call_operand.vmem [shape: f32[8,36], index: 2, kind: input, shape index: {}]   ;;  %s1227_s3 = inlined_call_operand.vmem [shape: f32[8,1], index: 3, kind: input, shape index: {}]   ;;  %s1228_s4 = inlined_call_operand.vmem [shape: f32[8,1], index: 4, kind: input, shape index: {}]   ;;  %s1229_s5 = inlined_call_operand.vmem [shape: f32[8,72], index: 5, kind: input, shape index: {}]   ;;  %s1230_s6 = inlined_call_operand.vmem [shape: f32[8,1], index: 6, kind: input, shape index: {}]   ;;  %s1231_s7 = inlined_call_operand.vmem [shape: f32[8,1], index: 7, kind: input, shape index: {}]   ;;  %s1232_s8 = inlined_call_operand.vmem [shape: f32[2,8,1], index: 8, kind: input, shape index: {}]   ;;  %s1233_s9 = inlined_call_operand.vmem [shape: f32[2,8,128], index: 9, kind: output, shape index: {}]  }
   0x1 LB: > { %s874_s10 = sadd.s32 4294967295, %s1042_s30   ;;  %p878_p0 = scmp.ge.s32.totalorder %s1042_s30, 1  ;;  %s1042_s30 = sphi %s1108_s30, %s19_s30  }
   0x2   : > { %p295_p1 = scmp.lt.s32.totalorder %s1042_s30, 3 }
   0x4   : > { %p296_p2 = pnand %p878_p0, %p295_p1 }
   0x5   : > { %p333_p3 = scmp.lt.s32.totalorder (!%p296_p2), %s874_s10, 1  ;;  %vm347_vm0 = vcmask (!%p296_p2), 134144   ;;  %vm349_vm1 = vcmask (!%p296_p2), 273544   ;;  %vm355_vm2 = vcmask (!%p296_p2), 138240   ;;  %v1044_v0 = vmov (!%p296_p2), 0.0   ;;  %s1045_s15 = smov (!%p296_p2), 17  }
   0x6   : > { %299 = sbr.rel (%p296_p2) target bundleno = 2029 (0x7ed), region = 56  ;;  %348 = vst.msk [vmem:[#allocation2] sm:$0xf] (!%p296_p2), %vm347_vm0, %v1044_v0  ;;  %vm358_vm3 = vcmask (!%p296_p2), 1043592   ;;  %vm359_vm4 = vcmask (!%p296_p2), 138244   ;;  %s1046_s16 = smov (!%p296_p2), 126  }
   0x7   : > { %350 = vst.msk [vmem:[#allocation2 + $0x4] sm:$0xf] (!%p296_p2), %vm349_vm1, %v1044_v0  ;;  %vm360_vm5 = vmor (!%p296_p2), %vm359_vm4, %vm358_vm3  ;;  %s1047_s17 = smov (!%p296_p2), 127   ;;  %s1048_s18 = smov (!%p296_p2), 112   ;;  %v1052_v7 = vmov (!%p296_p2), 0.0|0.0   ;;  %vm1054_vm6 = vmmov (!%p296_p2), 0  }
   0x8   : > { %597 = vst.msk [vmem:[#allocation4] sm:$0xff] (!%p296_p2), %vm355_vm2, %v1044_v0  ;;  %s1049_s19 = smov (!%p296_p2), 111   ;;  %s1050_s20 = smov (!%p296_p2), 110   ;;  %938 = vmatprep.subr.bf16.mxu0 (!%p296_p2), %v1052_v7  ;;  %944 = vmatprep.subr.bf16.mxu1 (!%p296_p2), %v1052_v7  ;;  %vm378_vm7 = vcmask (!%p296_p2), 1031168   ;;  %vm386_vm8 = vcmask (!%p296_p2), 916480   ;;  %vm394_vm9 = vcmask (!%p296_p2), 908288  }
   0x9   : > { %s1051_s21 = smov (!%p296_p2), 96   ;;  %s1053_s22 = smov (!%p296_p2), 95   ;;  %914 = vmatprep.mubr.msk.f32.mxu0 (!%p296_p2), %vm1054_vm6, %v1044_v0  ;;  %935 = vmatprep.mubr.msk.f32.mxu1 (!%p296_p2), %vm1054_vm6, %v1044_v0  ;;  %vm402_vm10 = vcmask (!%p296_p2), 900096   ;;  %vm410_vm11 = vcmask (!%p296_p2), 785408   ;;  %vm370_vm12 = vcmask (!%p296_p2), 1039360   ;;  %vm418_vm13 = vcmask (!%p296_p2), 777216  }
   0xa   : > { %s1055_s23 = smov (!%p296_p2), 94   ;;  %vm426_vm14 = vcmask (!%p296_p2), 769024   ;;  %vm440_vm15 = vcmask (!%p296_p2), 1043456   ;;  %v430_v38 = vld [vmem:[%s1226_s2] sm:$0xff] (!%p296_p2)  ;;  %vm436_vm0 = vcmask (!%p296_p2), 293888   ;;  %v1056_v55 = vmov (!%p296_p2), 0  }
   0xb   : > { %v1164_v40 = vld [vmem:[%s1225_s1] ss:$0 sm:$0xff] (!%p296_p2)  ;;  %990 = vset.pattern.permute.xlu0 (!%p296_p2), %v1056_v55  ;;  %991 = vset.pattern.permute.xlu1 (!%p296_p2), %v1056_v55  ;;  %vm598_vm1 = vcmask (!%p296_p2), 277640   ;;  %vm604_vm4 = vcmask (!%p296_p2), 1047688  }
   0xc   : > { %v562_v56 = vld [vmem:[%s1228_s4] sm:$0xff] (!%p296_p2)  ;;  %599 = vst.msk [vmem:[#allocation4 + $0x8] sm:$0xff] (!%p296_p2), %vm598_vm1, %v1044_v0 }
   0xd   : > { %s1235_s10 = smov (!%p333_p3, %s874_s10), 1  ;;  %v555_v57 = vld [vmem:[%s1227_s3] sm:$0xff] }
   0xe   : > { %s879_s11 = sshll.u32 %s1235_s10, 2 }
   0xf   : > { %s336_s14 = scalar_lea.vmem %s1224_s0, %s879_s11 }
  0x10   : > { %v346_v1 = vld [vmem:[%s336_s14] sm:$0xf] }
  0x11   : > { %352 = vrot.lane.b32.xlu0 %v346_v1, %s1045_s15 }
  0x83   : > { %v353_v2 = vpop.permute.xlu0 %352 }
  0x84   : > { %v354_v3 = vrot.slane %v353_v2, 4 }
  0x86   : > { %v356_v4 = vsel %vm355_vm2, %v354_v3, %v353_v2 }
  0x87   : > { %361 = vst.msk [vmem:[#allocation2] sm:$0xff] %vm360_vm5, %v356_v4 }
  0x8e   : > { %v362_v5 = vld [vmem:[#allocation2] sm:$0xff] }
  0x8f   : > { %374 = vrot.lane.b32.xlu1 %v362_v5, %s1046_s16  ;;  %363 = vst [vmem:[#allocation3] sm:$0xf] %v362_v5  ;;  %366 = vrot.lane.b32.xlu0 %v362_v5, %s1047_s17  ;;  %v365_v6 = vcombine.high %v362_v5, %v362_v5 }
  0x93   : > { %382 = vrot.lane.b32.xlu1 %v362_v5, %s1048_s18  ;;  %376 = vrot.lane.b32.xlu0 %v365_v6, %s1046_s16 }
  0x97   : > { %390 = vrot.lane.b32.xlu1 %v362_v5, %s1049_s19  ;;  %384 = vrot.lane.b32.xlu0 %v365_v6, %s1048_s18 }
  0x9b   : > { %398 = vrot.lane.b32.xlu1 %v362_v5, %s1050_s20  ;;  %392 = vrot.lane.b32.xlu0 %v365_v6, %s1049_s19 }
  0x9f   : > { %406 = vrot.lane.b32.xlu1 %v362_v5, %s1051_s21  ;;  %400 = vrot.lane.b32.xlu0 %v365_v6, %s1050_s20 }
  0xa3   : > { %408 = vrot.lane.b32.xlu0 %v365_v6, %s1051_s21  ;;  %368 = vrot.lane.b32.xlu1 %v365_v6, %s1047_s17 }
  0xa7   : > { %416 = vrot.lane.b32.xlu0 %v365_v6, %s1053_s22  ;;  %414 = vrot.lane.b32.xlu1 %v362_v5, %s1053_s22 }
  0xab   : > { %424 = vrot.lane.b32.xlu0 %v365_v6, %s1055_s23  ;;  %422 = vrot.lane.b32.xlu1 %v362_v5, %s1055_s23 }
 0x101   : > { %v375_v8 = vpop.permute.xlu1 %374  ;;  %v367_v9 = vpop.permute.xlu0 %366 }
 0x105   : > { %v383_v10 = vpop.permute.xlu1 %382  ;;  %v377_v11 = vpop.permute.xlu0 %376 }
 0x106   : > { %v379_v12 = vsel %vm378_vm7, %v375_v8, %v377_v11 }
 0x107   : > { %381 = vst [vmem:[#allocation3 + $0x8] sm:$0xf] %v379_v12 }
 0x109   : > { %v391_v13 = vpop.permute.xlu1 %390  ;;  %v385_v14 = vpop.permute.xlu0 %384 }
 0x10a   : > { %v387_v15 = vsel %vm386_vm8, %v383_v10, %v385_v14 }
 0x10b   : > { %389 = vst [vmem:[#allocation3 + $0xc] sm:$0xf] %v387_v15 }
 0x10d   : > { %v399_v16 = vpop.permute.xlu1 %398  ;;  %v393_v17 = vpop.permute.xlu0 %392 }
 0x10e   : > { %v395_v18 = vsel %vm394_vm9, %v391_v13, %v393_v17 }
 0x10f   : > { %397 = vst [vmem:[#allocation3 + $0x10] sm:$0xf] %v395_v18 }
 0x111   : > { %v407_v19 = vpop.permute.xlu1 %406  ;;  %v401_v20 = vpop.permute.xlu0 %400 }
 0x112   : > { %v403_v21 = vsel %vm402_vm10, %v399_v16, %v401_v20  ;;  %v432_v33 = vld [vmem:[#allocation3 + $0x8] sm:$0xff] }
 0x113   : > { %405 = vst [vmem:[#allocation3 + $0x14] sm:$0xf] %v403_v21 }
 0x115   : > { %v409_v22 = vpop.permute.xlu0 %408  ;;  %v369_v23 = vpop.permute.xlu1 %368 }
 0x116   : > { %v411_v24 = vsel %vm410_vm11, %v407_v19, %v409_v22  ;;  %v371_v25 = vsel %vm370_vm12, %v367_v9, %v369_v23 }
 0x117   : > { %413 = vst [vmem:[#allocation3 + $0x18] sm:$0xf] %v411_v24  ;;  %373 = vst [vmem:[#allocation3 + $0x4] sm:$0xf] %v371_v25 }
 0x119   : > { %v417_v26 = vpop.permute.xlu0 %416  ;;  %v415_v27 = vpop.permute.xlu1 %414 }
 0x11a   : > { %v419_v28 = vsel %vm418_vm13, %v415_v27, %v417_v26  ;;  %v433_v35 = vld [vmem:[#allocation3 + $0x10] sm:$0xff] }
 0x11b   : > { %421 = vst [vmem:[#allocation3 + $0x1c] sm:$0xf] %v419_v28 }
 0x11d   : > { %v425_v29 = vpop.permute.xlu0 %424  ;;  %v423_v30 = vpop.permute.xlu1 %422 }
 0x11e   : > { %v427_v31 = vsel %vm426_vm14, %v423_v30, %v425_v29  ;;  %v431_v32 = vld [vmem:[#allocation3] sm:$0xff] }
 0x11f   : > { %429 = vst [vmem:[#allocation3 + $0x20] sm:$0xf] %v427_v31  ;;  %v939_v34 = vpack.c.bf16 %v432_v33, %v431_v32  ;;  %v1057_v31 = vmov -1.0  }
 0x121   : > { %940 = vmatpush3.bf16.msra.mxu0 %v939_v34 }
 0x122   : > { %941 = vmatprep.subr.bf16.mxu0 %v1052_v7  ;;  %v434_v36 = vld [vmem:[#allocation3 + $0x18] sm:$0xff] }
 0x123   : > { %v942_v37 = vpack.c.bf16 %v434_v36, %v433_v35 }
 0x125   : > { %943 = vmatpush3.bf16.msra.mxu0 %v942_v37 }
 0x126   : > { %912 = vmatprep.subr.mxu0 %v1044_v0  ;;  %v435_v39 = vld [vmem:[#allocation3 + $0x20] sm:$0xf] }
 0x129   : > { %913 = vmatpush3.msk.msra.mxu0 %vm440_vm15, %v435_v39 }
 0x12a   : > { %915 = vmatmul.mubr.msk.f32.vlgmr.msra.gmra.mrb[0].mxu0 %vm436_vm0, %v430_v38 }
 0x1fd   : > { %v510_v41 = vpop.f32.mrb[0].mxu0 }
 0x1fe   : > { %v520_v42 = vmul.f32 %v1164_v40, %v510_v41  ;;  %v916_v43 = vpop.f32.mrb[1].mxu0 }
 0x200   : > { %521 = vadd.xlane.f32.xlu1 %v520_v42 }
 0x211   : > { %565 = vperm.xlu1 %991, %v562_v56  }
 0x28d   : > { %v522_v44 = vpop.xlane.xlu1 %521 }
 0x28e   : > { %v523_v45 = vrot.slane %v522_v44, 4 }
 0x290   : > { %v524_v46 = vadd.f32 %v523_v45, %v522_v44 }
 0x291   : > { %v566_v8 = vpop.permute.xlu1 %565 }
 0x292   : > { %v525_v47 = vrot.slane %v524_v46, 2 }
 0x294   : > { %v526_v48 = vadd.f32 %v525_v47, %v524_v46 }
 0x296   : > { %v527_v49 = vrot.slane %v526_v48, 1 }
 0x298   : > { %v528_v50 = vadd.f32 %v527_v49, %v526_v48 }
 0x29a   : > { %956 = vpush %v528_v50 }
 0x2cb   : > { %s957_s28 = spop %956 }
 0x2cc   : > { %s532_s29 = smul.f32 0.001953125, %s957_s28 }
 0x2ce   : > { %v533_v51 = vstv %s532_s29 }
 0x2cf   : > { %v534_v52 = vsub.f32 %v520_v42, %v533_v51 }
 0x2d1   : > { %v535_v53 = vmul.f32 %v1164_v40, %v534_v52 }
 0x2d3   : > { %v536_v54 = vmul.f32 %v535_v53, %v535_v53 }
 0x2d5   : > { %537 = vadd.xlane.f32.xlu0 %v536_v54 }
 0x2eb   : > { %558 = vperm.xlu0 %990, %v555_v57  }
 0x362   : > { %v538_v58 = vpop.xlane.xlu0 %537 }
 0x363   : > { %v539_v59 = vrot.slane %v538_v58, 4 }
 0x365   : > { %v540_v60 = vadd.f32 %v539_v59, %v538_v58 }
 0x367   : > { %v541_v61 = vrot.slane %v540_v60, 2 }
 0x369   : > { %v542_v62 = vadd.f32 %v541_v61, %v540_v60 }
 0x36a   : > { %v559_v5 = vpop.permute.xlu0 %558 }
 0x36b   : > { %v543_v63 = vrot.slane %v542_v62, 1 }
 0x36d   : > { %v544_v1 = vadd.f32 %v543_v63, %v542_v62 }
 0x36f   : > { %958 = vpush %v544_v1 }
 0x3a0   : > { %s959_s24 = spop %958 }
 0x3a1   : > { %s548_s25 = smul.f32 0.001953125, %s959_s24 }
 0x3a3   : > { %s549_s26 = sadd.f32 1e-05, %s548_s25 }
 0x3a5   : > { %v550_v2 = vstv %s549_s26 }
 0x3a6   : > { %1028 = vrsqrt.f32 %v550_v2 }
 0x3b0   : > { %v1029_v3 = vpop.eup %1028 }
 0x3b1   : > { %960 = vpush %v1029_v3 }
 0x3e2   : > { %s961_s27 = spop %960 }
 0x3e3   : > { %v553_v4 = vstv %s961_s27 }
 0x3e4   : > { %v554_v6 = vmul.f32 %v553_v4, %v535_v53 }
 0x3e6   : > { %v561_v9 = vmul.f32 %v559_v5, %v554_v6 }
 0x3e8   : > { %v568_v10 = vadd.f32 %v566_v8, %v561_v9 }
 0x3ea   : > { %v570_v11 = vmul.f32 0.70710677, %v568_v10  ;;  %v569_v34 = vmul.f32 0.5, %v568_v10 }
 0x3ec   : > { %v573_v12 = vand.u32 2147483647, %v570_v11  ;;  %vm571_vm3 = vcmp.ge.f32.partialorder %v570_v11, 0.0 }
 0x3ed   : > { %v572_v32 = vsel %vm571_vm3, 1.0, %v1057_v31  ;;  %v787_v31 = vld [vmem:[%s1230_s6] sm:$0xff] }
 0x3ee   : > { %v574_v13 = vmul.f32 0.3275911, %v573_v12  ;;  %v587_v15 = vsub.f32 0.0, %v573_v12 }
 0x3f0   : > { %v575_v14 = vadd.f32 1.0, %v574_v13  ;;  %v588_v17 = vmul.f32 %v587_v15, %v573_v12  ;;  %v668_v15 = vld [vmem:[%s1229_s5] sm:$0xff] }
 0x3f2   : > { %1030 = vrcp.f32 %v575_v14  ;;  %v589_v20 = vmul.f32 1.442695, %v588_v17 }
 0x3f4   : > { %1032 = vpow2.f32 %v589_v20 }
 0x3fc   : > { %v1031_v16 = vpop.eup %1030 }
 0x3fd   : > { %v578_v18 = vmul.f32 1.0614054, %v1031_v16 }
 0x3fe   : > { %v1033_v28 = vpop.eup %1032 }
 0x3ff   : > { %v579_v19 = vadd.f32 -1.4531521, %v578_v18 }
 0x401   : > { %v580_v21 = vmul.f32 %v1031_v16, %v579_v19 }
 0x403   : > { %v581_v22 = vadd.f32 1.4214138, %v580_v21 }
 0x405   : > { %v582_v23 = vmul.f32 %v1031_v16, %v581_v22 }
 0x407   : > { %v583_v24 = vadd.f32 -0.28449672, %v582_v23 }
 0x409   : > { %v584_v25 = vmul.f32 %v1031_v16, %v583_v24 }
 0x40b   : > { %v585_v26 = vadd.f32 0.2548296, %v584_v25 }
 0x40d   : > { %v586_v27 = vmul.f32 %v1031_v16, %v585_v26 }
 0x40f   : > { %v591_v29 = vmul.f32 %v1033_v28, %v586_v27 }
 0x411   : > { %v592_v30 = vsub.f32 1.0, %v591_v29 }
 0x413   : > { %v593_v33 = vmul.f32 %v592_v30, %v572_v32 }
 0x415   : > { %v594_v35 = vadd.f32 1.0, %v593_v33 }
 0x417   : > { %v595_v36 = vmul.f32 %v594_v35, %v569_v34 }
 0x419   : > { %v596_v37 = vmul.f32 %v1164_v40, %v595_v36 }
 0x41b   : > { %601 = vrot.lane.b32.xlu1 %v596_v37, %s1045_s15 }
 0x48d   : > { %v602_v38 = vpop.permute.xlu1 %601 }
 0x48e   : > { %605 = vst.msk [vmem:[#allocation4] sm:$0xff] %vm604_vm4, %v602_v38 }
 0x48f   : > { %606 = vst.msk [vmem:[#allocation4 + $0x8] sm:$0xff] %vm355_vm2, %v602_v38  ;;  %vm678_vm2 = vcmask 588800  }
 0x495   : > { %v607_v39 = vld [vmem:[#allocation4] sm:$0xff] }
 0x496   : > { %v608_v41 = vld [vmem:[#allocation4 + $0x8] sm:$0xff] }
 0x497   : > { %v1022_v42 = vpack.i.bf16 %v608_v41, %v607_v39 }
 0x499   : > { %1023 = vrot.lane.b32.xlu0 %v1022_v42, %s1053_s22  ;;  %993 = vrot.lane.b32.xlu1 %v1022_v42, %s1047_s17  ;;  %s880_s17 = sshll.u32 %s1235_s10, 3 }
 0x49a   : > { %s340_s22 = scalar_lea.vmem %s1232_s8, %s880_s17  ;;  %s344_s27 = scalar_lea.vmem %s1233_s9, %s880_s17 }
 0x49b   : > { %v801_v19 = vld [vmem:[%s340_s22] sm:$0xff] }
 0x49d   : > { %663 = vrot.lane.b32.xlu0 %v608_v41, %s1055_s23  ;;  %998 = vrot.lane.b32.xlu1 %v1022_v42, %s1046_s16 }
 0x4a1   : > { %1003 = vrot.lane.b32.xlu1 %v1022_v42, %s1048_s18 }
 0x4a5   : > { %1008 = vrot.lane.b32.xlu1 %v1022_v42, %s1049_s19 }
 0x4a9   : > { %1013 = vrot.lane.b32.xlu1 %v1022_v42, %s1050_s20 }
 0x4ad   : > { %1018 = vrot.lane.b32.xlu1 %v1022_v42, %s1051_s21 }
 0x4b1   : > { %661 = vrot.lane.b32.xlu1 %v607_v39, %s1055_s23 }
 0x50b   : > { %v994_v43 = vpop.permute.xlu1 %993  ;;  %v1024_v60 = vpop.permute.xlu0 %1023 }
 0x50c   : > { %v996_v44 = vunpack.i.h.bf16 %v994_v43  ;;  %v995_v45 = vunpack.i.l.bf16 %v994_v43  ;;  %v1026_v1 = vunpack.i.h.bf16 %v1024_v60  ;;  %v1025_v2 = vunpack.i.l.bf16 %v1024_v60 }
 0x50e   : > { %v616_v46 = vsel %vm370_vm12, %v995_v45, %v996_v44  ;;  %v658_v11 = vsel %vm418_vm13, %v1025_v2, %v1026_v1 }
 0x50f   : > { %v999_v47 = vpop.permute.xlu1 %998  ;;  %v945_v48 = vpack.c.bf16 %v616_v46, %v607_v39  ;;  %v664_v14 = vpop.permute.xlu0 %663 }
 0x510   : > { %v1001_v49 = vunpack.i.h.bf16 %v999_v47  ;;  %v1000_v50 = vunpack.i.l.bf16 %v999_v47 }
 0x511   : > { %946 = vmatpush3.bf16.msra.mxu1 %v945_v48 }
 0x512   : > { %947 = vmatprep.subr.bf16.mxu1 %v1052_v7  ;;  %v623_v54 = vsel %vm378_vm7, %v1000_v50, %v1001_v49 }
 0x513   : > { %v1004_v51 = vpop.permute.xlu1 %1003 }
 0x514   : > { %v1006_v52 = vunpack.i.h.bf16 %v1004_v51  ;;  %v1005_v53 = vunpack.i.l.bf16 %v1004_v51 }
 0x516   : > { %v630_v55 = vsel %vm386_vm8, %v1005_v53, %v1006_v52 }
 0x517   : > { %v1009_v56 = vpop.permute.xlu1 %1008  ;;  %v948_v57 = vpack.c.bf16 %v630_v55, %v623_v54 }
 0x518   : > { %v1011_v58 = vunpack.i.h.bf16 %v1009_v56  ;;  %v1010_v59 = vunpack.i.l.bf16 %v1009_v56 }
 0x519   : > { %949 = vmatpush3.bf16.msra.mxu1 %v948_v57 }
 0x51a   : > { %950 = vmatprep.subr.bf16.mxu1 %v1052_v7  ;;  %v637_v3 = vsel %vm394_vm9, %v1010_v59, %v1011_v58 }
 0x51b   : > { %v1014_v61 = vpop.permute.xlu1 %1013 }
 0x51c   : > { %v1016_v62 = vunpack.i.h.bf16 %v1014_v61  ;;  %v1015_v63 = vunpack.i.l.bf16 %v1014_v61 }
 0x51e   : > { %v644_v4 = vsel %vm402_vm10, %v1015_v63, %v1016_v62 }
 0x51f   : > { %v1019_v5 = vpop.permute.xlu1 %1018  ;;  %v951_v6 = vpack.c.bf16 %v644_v4, %v637_v3 }
 0x520   : > { %v1021_v8 = vunpack.i.h.bf16 %v1019_v5  ;;  %v1020_v9 = vunpack.i.l.bf16 %v1019_v5 }
 0x521   : > { %952 = vmatpush3.bf16.msra.mxu1 %v951_v6 }
 0x522   : > { %953 = vmatprep.subr.bf16.mxu1 %v1052_v7  ;;  %v651_v10 = vsel %vm410_vm11, %v1020_v9, %v1021_v8 }
 0x523   : > { %v954_v12 = vpack.c.bf16 %v658_v11, %v651_v10  ;;  %v662_v13 = vpop.permute.xlu1 %661 }
 0x524   : > { %v665_v16 = vsel %vm426_vm14, %v662_v13, %v664_v14 }
 0x525   : > { %955 = vmatpush3.bf16.msra.mxu1 %v954_v12 }
 0x526   : > { %933 = vmatprep.subr.mxu1 %v1044_v0  ;;  %v794_v0 = vld [vmem:[%s1231_s7] sm:$0xff] }
 0x529   : > { %934 = vmatpush3.msra.mxu1 %v665_v16 }
 0x52a   : > { %936 = vmatmul.mubr.msk.f32.vlgmr.msra.gmra.mrb[0].mxu1 %vm678_vm2, %v668_v15 }
 0x5fd   : > { %v748_v7 = vpop.f32.mrb[0].mxu1 }
 0x5fe   : > { %v752_v17 = vmul.f32 %v1164_v40, %v748_v7  ;;  %v937_v18 = vpop.f32.mrb[1].mxu1 }
 0x600   : > { %753 = vadd.xlane.f32.xlu1 %v752_v17 }
 0x611   : > { %797 = vperm.xlu1 %991, %v794_v0  }
 0x615   : > { %804 = vperm.xlu1 %991, %v801_v19  }
 0x68d   : > { %v754_v20 = vpop.xlane.xlu1 %753 }
 0x68e   : > { %v755_v21 = vrot.slane %v754_v20, 4 }
 0x690   : > { %v756_v22 = vadd.f32 %v755_v21, %v754_v20 }
 0x691   : > { %v798_v41 = vpop.permute.xlu1 %797 }
 0x692   : > { %v757_v23 = vrot.slane %v756_v22, 2 }
 0x694   : > { %v758_v24 = vadd.f32 %v757_v23, %v756_v22 }
 0x695   : > { %v805_v47 = vpop.permute.xlu1 %804 }
 0x696   : > { %v759_v25 = vrot.slane %v758_v24, 1 }
 0x698   : > { %v760_v26 = vadd.f32 %v759_v25, %v758_v24 }
 0x69a   : > { %962 = vpush %v760_v26 }
 0x6cb   : > { %s963_s23 = spop %962 }
 0x6cc   : > { %s764_s28 = smul.f32 0.001953125, %s963_s23 }
 0x6ce   : > { %v765_v27 = vstv %s764_s28 }
 0x6cf   : > { %v766_v28 = vsub.f32 %v752_v17, %v765_v27 }
 0x6d1   : > { %v767_v29 = vmul.f32 %v1164_v40, %v766_v28 }
 0x6d3   : > { %v768_v30 = vmul.f32 %v767_v29, %v767_v29 }
 0x6d5   : > { %769 = vadd.xlane.f32.xlu0 %v768_v30 }
 0x6eb   : > { %790 = vperm.xlu0 %990, %v787_v31  }
 0x762   : > { %v770_v32 = vpop.xlane.xlu0 %769 }
 0x763   : > { %v771_v33 = vrot.slane %v770_v32, 4 }
 0x765   : > { %v772_v34 = vadd.f32 %v771_v33, %v770_v32 }
 0x767   : > { %v773_v35 = vrot.slane %v772_v34, 2 }
 0x769   : > { %v774_v36 = vadd.f32 %v773_v35, %v772_v34 }
 0x76a   : > { %v791_v44 = vpop.permute.xlu0 %790 }
 0x76b   : > { %v775_v37 = vrot.slane %v774_v36, 1 }
 0x76d   : > { %v776_v38 = vadd.f32 %v775_v37, %v774_v36 }
 0x76f   : > { %964 = vpush %v776_v38 }
 0x7a0   : > { %s965_s12 = spop %964 }
 0x7a1   : > { %s780_s13 = smul.f32 0.001953125, %s965_s12 }
 0x7a3   : > { %s781_s14 = sadd.f32 1e-05, %s780_s13 }
 0x7a5   : > { %v782_v40 = vstv %s781_s14 }
 0x7a6   : > { %1034 = vrsqrt.f32 %v782_v40 }
 0x7b0   : > { %v1035_v39 = vpop.eup %1034 }
 0x7b1   : > { %966 = vpush %v1035_v39 }
 0x7e2   : > { %s967_s24 = spop %966 }
 0x7e3   : > { %v785_v42 = vstv %s967_s24 }
 0x7e4   : > { %v786_v43 = vmul.f32 %v785_v42, %v767_v29 }
 0x7e6   : > { %v793_v45 = vmul.f32 %v791_v44, %v786_v43 }
 0x7e8   : > { %v800_v46 = vadd.f32 %v798_v41, %v793_v45 }
 0x7ea   : > { %v807_v48 = vadd.f32 %v805_v47, %v800_v46 }
 0x7ec   : > { %808 = vst [vmem:[%s344_s27] sm:$0xff] %v807_v48 }
 0x7ed PF: > { %s19_s30 = sadd.s32 1, %s1042_s30  }
 0x7ee   : > { %p16_p4 = scmp.ge.s32.totalorder %s19_s30, 4  }
 0x7f0   :  { %18 = sbr.rel (!%p16_p4) target bundleno = 1 (0x1), region = 89 }

</bundles_post_ra>
